<compile_context>
chip_gen: v6e
topology: v6e:2x2x1
jax: 0.10.0
libtpu: 0.0.40
codegen_flags: <defaults>
</compile_context>

<pallas_src>
import functools

import jax
import jax.numpy as jnp
from jax.experimental import pallas as pl
from jax.experimental.pallas import tpu as pltpu


# ---------------------------------------------------------------------------
# In-kernel helpers (traced inside the Pallas kernel body)
# ---------------------------------------------------------------------------
def _layernorm(x, gamma, beta, eps=1e-5):
    mu = jnp.mean(x, axis=-1, keepdims=True)
    var = jnp.mean((x - mu) ** 2, axis=-1, keepdims=True)
    return (x - mu) * jax.lax.rsqrt(var + eps) * gamma + beta


def _gelu_exact(x):
    # PyTorch nn.GELU() default (approximate='none'): 0.5*x*(1+erf(x/sqrt(2)))
    return 0.5 * x * (1.0 + jax.lax.erf(x * 0.7071067811865476))


# ---------------------------------------------------------------------------
# Pallas kernel: one (TB bags) x (TN patches) tile per grid step.
# Online-softmax state (m, l, acc) lives in VMEM scratch across the N axis.
# ---------------------------------------------------------------------------
def abmil_kernel(x_ref, w1_ref, w2_ref, wab_ref, vh_ref, va_ref,
                 out_ref, m_sc, l_sc, acc_sc, *, n_valid, apply_mask):
    ni = pl.program_id(1)

    @pl.when(ni == 0)
    def _init():
        m_sc[...] = jnp.full_like(m_sc, -jnp.inf)
        l_sc[...] = jnp.zeros_like(l_sc)
        acc_sc[...] = jnp.zeros_like(acc_sc)

    tb, tn, d = x_ref.shape
    hdim = w1_ref.shape[1]
    a_dim = va_ref.shape[1]

    # packed LayerNorm / bias vectors
    b1, g1, be1 = vh_ref[0:1, :], vh_ref[1:2, :], vh_ref[2:3, :]
    b2, g2, be2 = vh_ref[3:4, :], vh_ref[4:5, :], vh_ref[5:6, :]
    ba, bb = va_ref[0:1, :], va_ref[1:2, :]
    wc, bc = va_ref[2:3, :], va_ref[3:4, 0:1]

    x = x_ref[...].reshape(tb * tn, d)

    # pre_attn: Linear -> LayerNorm -> GELU -> Dropout(id)
    #           -> Linear -> LayerNorm -> GELU -> Dropout(id)
    h = jnp.dot(x, w1_ref[...], preferred_element_type=jnp.float32) + b1
    h = _gelu_exact(_layernorm(h, g1, be1))
    h = jnp.dot(h, w2_ref[...], preferred_element_type=jnp.float32) + b2
    h = _gelu_exact(_layernorm(h, g2, be2))                    # (tb*tn, H)

    # gated ABMIL attention: fused tanh/sigmoid branches -> one MXU launch
    ag = jnp.dot(h, wab_ref[...], preferred_element_type=jnp.float32)  # (tb*tn, 2A)
    a = jnp.tanh(ag[:, :a_dim] + ba)
    g = jax.nn.sigmoid(ag[:, a_dim:] + bb)
    # attention_c (A -> 1): VPU multiply + lane reduction (avoid a width-1,
    # lane-sparse MXU matmul).  bc cancels in the softmax but is kept for
    # fidelity with the module.
    s = jnp.sum(((a * g) * wc).reshape(tb, tn, a_dim), axis=-1) + bc   # (tb, tn)

    if apply_mask:
        # mask patch rows introduced by padding N up to a multiple of TN
        idx = ni * tn + jax.lax.broadcasted_iota(jnp.int32, (tb, tn), 1)
        s = jnp.where(idx < n_valid, s, -jnp.inf)

    # online softmax over the patch dimension + weighted aggregation
    m_prev = m_sc[...]                                                 # (tb, 1)
    m_new = jnp.maximum(m_prev, jnp.max(s, axis=1, keepdims=True))
    alpha = jnp.exp(m_prev - m_new)
    p = jnp.exp(s - m_new)                                             # (tb, tn)
    l_sc[...] = alpha * l_sc[...] + jnp.sum(p, axis=1, keepdims=True)
    h3 = h.reshape(tb, tn, hdim)
    acc_sc[...] = alpha * acc_sc[...] + jnp.sum(p[:, :, None] * h3, axis=1)
    m_sc[...] = m_new

    @pl.when(ni == pl.num_programs(1) - 1)
    def _finalize():
        out_ref[...] = (acc_sc[...] / l_sc[...]).astype(out_ref.dtype)


# ---------------------------------------------------------------------------
# Wrapper
# ---------------------------------------------------------------------------
def _round_up(x, m):
    return (x + m - 1) // m * m


def _choose_tiles(B, N, D, H, bytes_per_elt=4, bags_budget_bytes=24 * 1024 * 1024):
    # Small bags: batch several per step to amortize per-step overhead and fill
    # the MXU M dimension.  Large bags: one bag per step so the N tile can grow.
    TB = min(B, 8) if N <= 1024 else 1
    # Largest multiple-of-8 TN such that the double-buffered bags tile plus the
    # (TB*TN, H) activations stay well inside scoped VMEM on every generation
    # (including v7x's 64 MiB physical VMEM).
    per_row_bytes = TB * (2 * D + 2 * H) * bytes_per_elt
    tn_cap = max(8, (bags_budget_bytes // per_row_bytes) // 8 * 8)
    TN = min(_round_up(N, 8), tn_cap)
    return TB, TN


@functools.partial(jax.jit, static_argnames=('tb', 'tn'))
def abmil_embedder(bags, params, tb=None, tn=None):
    B, N, D = bags.shape
    H = params['w1'].shape[1]
    A = params['wa'].shape[1]
    f32 = jnp.float32

    TB, TN = _choose_tiles(B, N, D, H)
    if tb is not None:
        TB = tb
    if tn is not None:
        TN = tn
    Bp = _round_up(B, TB)
    Np = _round_up(N, TN)
    if (Bp, Np) != (B, N):
        bags = jnp.pad(bags, ((0, Bp - B), (0, Np - N), (0, 0)))

    # pack parameters: fused attention weight + two stacked vector slabs
    wab = jnp.concatenate([params['wa'], params['wb']], axis=1)              # (H, 2A)
    vh = jnp.concatenate([params['b1'], params['g1'], params['be1'],
                          params['b2'], params['g2'], params['be2']], axis=0)  # (6, H)
    va = jnp.concatenate([params['ba'], params['bb'],
                          params['wc'].reshape(1, A),
                          jnp.broadcast_to(params['bc'].reshape(1, 1), (1, A))],
                         axis=0)                                             # (4, A)

    kernel = functools.partial(abmil_kernel, n_valid=N, apply_mask=(Np != N))

    def full(shape):
        return pl.BlockSpec(shape, lambda bi, ni: (0,) * len(shape))

    out = pl.pallas_call(
        kernel,
        out_shape=jax.ShapeDtypeStruct((Bp, H), f32),
        grid=(Bp // TB, Np // TN),
        in_specs=[
            pl.BlockSpec((TB, TN, D), lambda bi, ni: (bi, ni, 0)),
            full((D, H)),
            full((H, H)),
            full((H, 2 * A)),
            full((6, H)),
            full((4, A)),
        ],
        out_specs=pl.BlockSpec((TB, H), lambda bi, ni: (bi, 0)),
        scratch_shapes=[
            pltpu.VMEM((TB, 1), f32),   # running max
            pltpu.VMEM((TB, 1), f32),   # running softmax denominator
            pltpu.VMEM((TB, H), f32),   # running weighted sum of embeddings
        ],
        compiler_params=pltpu.CompilerParams(
            dimension_semantics=("parallel", "arbitrary"),
            vmem_limit_bytes=64 * 1024 * 1024),
    )(bags.astype(f32), params['w1'], params['w2'], wab, vh, va)
    return out[:B]


# ---------------------------------------------------------------------------
# Pure-JAX reference (mirrors the PyTorch forward exactly, eval mode)
# ---------------------------------------------------------------------------
def abmil_reference(bags, p):
    hp = jax.lax.Precision.HIGHEST
    h = jnp.matmul(bags, p['w1'], precision=hp) + p['b1']
    h = _gelu_exact(_layernorm(h, p['g1'], p['be1']))
    h = jnp.matmul(h, p['w2'], precision=hp) + p['b2']
    h = _gelu_exact(_layernorm(h, p['g2'], p['be2']))
    a = jnp.tanh(jnp.matmul(h, p['wa'], precision=hp) + p['ba'])
    g = jax.nn.sigmoid(jnp.matmul(h, p['wb'], precision=hp) + p['bb'])
    logits = jnp.matmul(a * g, p['wc'], precision=hp) + p['bc']   # (B, N, 1)
    attn = jax.nn.softmax(logits, axis=1)
    return jnp.sum(h * attn, axis=1)                              # (B, H)


# ---------------------------------------------------------------------------
# Main
# ---------------------------------------------------------------------------
if __name__ == "__main__":
    # Shapes consistent with the module:
    #   pre_attention_params = {'input_dim': 32, 'hidden_dim': 32}
    #   attention_params     = {'model': 'ABMIL',
    #                           'params': {'input_dim': 32, 'hidden_dim': 16,
    #                                      'n_classes': 1, 'activation': 'softmax'}}
    B, N, D, H, A = 2, 8, 32, 32, 16

    key = jax.random.PRNGKey(0)
    ks = jax.random.split(key, 12)

    params = {
        # pre_attn Linear 1 + LayerNorm 1
        'w1':  0.05 * jax.random.normal(ks[0], (D, H), jnp.float32),
        'b1':  0.05 * jax.random.normal(ks[1], (1, H), jnp.float32),
        'g1':  jnp.ones((1, H), jnp.float32),
        'be1': jnp.zeros((1, H), jnp.float32),
        # pre_attn Linear 2 + LayerNorm 2
        'w2':  0.05 * jax.random.normal(ks[2], (H, H), jnp.float32),
        'b2':  0.05 * jax.random.normal(ks[3], (1, H), jnp.float32),
        'g2':  jnp.ones((1, H), jnp.float32),
        'be2': jnp.zeros((1, H), jnp.float32),
        # attention_a (tanh branch), attention_b (sigmoid branch), attention_c
        'wa':  0.05 * jax.random.normal(ks[4], (H, A), jnp.float32),
        'ba':  0.05 * jax.random.normal(ks[5], (1, A), jnp.float32),
        'wb':  0.05 * jax.random.normal(ks[6], (H, A), jnp.float32),
        'bb':  0.05 * jax.random.normal(ks[7], (1, A), jnp.float32),
        'wc':  0.05 * jax.random.normal(ks[8], (A, 1), jnp.float32),
        'bc':  0.05 * jax.random.normal(ks[9], (1, 1), jnp.float32),
    }

    # --- test 1: default tiling (all bags in one grid step) ----------------
    bags = jax.random.normal(ks[10], (B, N, D), jnp.float32)
    out = jax.block_until_ready(abmil_embedder(bags, params))
    ref = jax.block_until_ready(abmil_reference(bags, params))
    assert out.shape == (B, H), out.shape
    assert jnp.allclose(out, ref, atol=2e-3, rtol=2e-3), (
        f"max abs err = {float(jnp.max(jnp.abs(out - ref)))}")

    # --- test 2: forced small N tile -> multi-tile online softmax + masking
    # (N=20 is not a multiple of TN=8, so the padded patch rows are masked)
    B2, N2 = 3, 20
    bags2 = jax.random.normal(ks[11], (B2, N2, D), jnp.float32)
    out2 = jax.block_until_ready(abmil_embedder(bags2, params, tn=8))
    ref2 = jax.block_until_ready(abmil_reference(bags2, params))
    assert out2.shape == (B2, H), out2.shape
    assert jnp.allclose(out2, ref2, atol=2e-3, rtol=2e-3), (
        f"max abs err = {float(jnp.max(jnp.abs(out2 - ref2)))}")

    print("KERNEL_OK")
</pallas_src>

<mosaic_0001>
module attributes {stable_mosaic.version = 11 : i64} {
  func.func @abmil_kernel(%arg0: i32, %arg1: i32, %arg2: memref<2x8x32xf32, #tpu.memory_space<vmem>>, %arg3: memref<32x32xf32, #tpu.memory_space<vmem>>, %arg4: memref<32x32xf32, #tpu.memory_space<vmem>>, %arg5: memref<32x32xf32, #tpu.memory_space<vmem>>, %arg6: memref<6x32xf32, #tpu.memory_space<vmem>>, %arg7: memref<4x16xf32, #tpu.memory_space<vmem>>, %arg8: memref<2x32xf32, #tpu.memory_space<vmem>>, %arg9: memref<2x1xf32, #tpu.memory_space<vmem>>, %arg10: memref<2x1xf32, #tpu.memory_space<vmem>>, %arg11: memref<2x32xf32, #tpu.memory_space<vmem>>) attributes {dimension_semantics = [#tpu.dimension_semantics<parallel>, #tpu.dimension_semantics<arbitrary>], iteration_bounds = array<i64: 1, 1>, scalar_prefetch = 0 : i64, scratch_operands = 3 : i64, tpu.core_type = #tpu.core_type<tc>, window_params = [{transform_indices = @transform_0, window_bounds = array<i64: 2, 8, 32>}, {pipeline_mode = #tpu.pipeline_mode<synchronous>, transform_indices = @transform_1, window_bounds = array<i64: 32, 32>}, {pipeline_mode = #tpu.pipeline_mode<synchronous>, transform_indices = @transform_2, window_bounds = array<i64: 32, 32>}, {pipeline_mode = #tpu.pipeline_mode<synchronous>, transform_indices = @transform_3, window_bounds = array<i64: 32, 32>}, {pipeline_mode = #tpu.pipeline_mode<synchronous>, transform_indices = @transform_4, window_bounds = array<i64: 6, 32>}, {pipeline_mode = #tpu.pipeline_mode<synchronous>, transform_indices = @transform_5, window_bounds = array<i64: 4, 16>}, {transform_indices = @transform_6, window_bounds = array<i64: 2, 32>}]} {
    %c0_i32 = arith.constant 0 : i32
    %0 = arith.cmpi eq, %arg1, %c0_i32 : i32
    %1 = arith.extui %0 : i1 to i32
    %c0_i32_0 = arith.constant 0 : i32
    %2 = arith.cmpi ne, %1, %c0_i32_0 : i32
    scf.if %2 {
      %cst_61 = arith.constant 0xFF800000 : f32
      %133 = vector.broadcast %cst_61 : f32 to vector<2x1xf32>
      %c0_62 = arith.constant 0 : index
      %c0_63 = arith.constant 0 : index
      %134 = vector.load %arg9[%c0_62, %c0_63] : memref<2x1xf32, #tpu.memory_space<vmem>>, vector<2x1xf32>
      tpu.vector_store %arg9[%c0_62, %c0_63], %133 {strides = array<i32>} : memref<2x1xf32, #tpu.memory_space<vmem>>, vector<2x1xf32>,
      %cst_64 = arith.constant 0.000000e+00 : f32
      %135 = vector.broadcast %cst_64 : f32 to vector<2x1xf32>
      %c0_65 = arith.constant 0 : index
      %c0_66 = arith.constant 0 : index
      %136 = vector.load %arg10[%c0_65, %c0_66] : memref<2x1xf32, #tpu.memory_space<vmem>>, vector<2x1xf32>
      tpu.vector_store %arg10[%c0_65, %c0_66], %135 {strides = array<i32>} : memref<2x1xf32, #tpu.memory_space<vmem>>, vector<2x1xf32>,
      %cst_67 = arith.constant 0.000000e+00 : f32
      %137 = vector.broadcast %cst_67 : f32 to vector<2x32xf32>
      %c0_68 = arith.constant 0 : index
      %c0_69 = arith.constant 0 : index
      %138 = vector.load %arg11[%c0_68, %c0_69] : memref<2x32xf32, #tpu.memory_space<vmem>>, vector<2x32xf32>
      tpu.vector_store %arg11[%c0_68, %c0_69], %137 {strides = array<i32>} : memref<2x32xf32, #tpu.memory_space<vmem>>, vector<2x32xf32>,
    } else {
    }
    %c0 = arith.constant 0 : index
    %c0_1 = arith.constant 0 : index
    %3 = vector.load %arg6[%c0, %c0_1] : memref<6x32xf32, #tpu.memory_space<vmem>>, vector<1x32xf32>
    %c1 = arith.constant 1 : index
    %c0_2 = arith.constant 0 : index
    %4 = vector.load %arg6[%c1, %c0_2] : memref<6x32xf32, #tpu.memory_space<vmem>>, vector<1x32xf32>
    %c2 = arith.constant 2 : index
    %c0_3 = arith.constant 0 : index
    %5 = vector.load %arg6[%c2, %c0_3] : memref<6x32xf32, #tpu.memory_space<vmem>>, vector<1x32xf32>
    %c3 = arith.constant 3 : index
    %c0_4 = arith.constant 0 : index
    %6 = vector.load %arg6[%c3, %c0_4] : memref<6x32xf32, #tpu.memory_space<vmem>>, vector<1x32xf32>
    %c4 = arith.constant 4 : index
    %c0_5 = arith.constant 0 : index
    %7 = vector.load %arg6[%c4, %c0_5] : memref<6x32xf32, #tpu.memory_space<vmem>>, vector<1x32xf32>
    %c5 = arith.constant 5 : index
    %c0_6 = arith.constant 0 : index
    %8 = vector.load %arg6[%c5, %c0_6] : memref<6x32xf32, #tpu.memory_space<vmem>>, vector<1x32xf32>
    %c0_7 = arith.constant 0 : index
    %c0_8 = arith.constant 0 : index
    %9 = vector.load %arg7[%c0_7, %c0_8] : memref<4x16xf32, #tpu.memory_space<vmem>>, vector<1x16xf32>
    %c1_9 = arith.constant 1 : index
    %c0_10 = arith.constant 0 : index
    %10 = vector.load %arg7[%c1_9, %c0_10] : memref<4x16xf32, #tpu.memory_space<vmem>>, vector<1x16xf32>
    %c2_11 = arith.constant 2 : index
    %c0_12 = arith.constant 0 : index
    %11 = vector.load %arg7[%c2_11, %c0_12] : memref<4x16xf32, #tpu.memory_space<vmem>>, vector<1x16xf32>
    %c3_13 = arith.constant 3 : index
    %c0_14 = arith.constant 0 : index
    %12 = vector.load %arg7[%c3_13, %c0_14] : memref<4x16xf32, #tpu.memory_space<vmem>>, vector<1x1xf32>
    %c0_15 = arith.constant 0 : index
    %c0_16 = arith.constant 0 : index
    %c0_17 = arith.constant 0 : index
    %13 = vector.load %arg2[%c0_15, %c0_16, %c0_17] : memref<2x8x32xf32, #tpu.memory_space<vmem>>, vector<2x8x32xf32>
    %14 = vector.shape_cast %13 : vector<2x8x32xf32> to vector<16x32xf32>
    %c0_18 = arith.constant 0 : index
    %c0_19 = arith.constant 0 : index
    %15 = vector.load %arg3[%c0_18, %c0_19] : memref<32x32xf32, #tpu.memory_space<vmem>>, vector<32x32xf32>
    %cst = arith.constant dense<0.000000e+00> : vector<16x32xf32>
    %16 = tpu.matmul %14, %15, %cst {dimension_numbers = #tpu.dot_dimension_numbers<[1], [0], [0], [1], [0, 0, 1, 1], [], []>} : vector<16x32xf32>, vector<32x32xf32>, vector<16x32xf32> -> vector<16x32xf32>
    %17 = vector.broadcast %3 : vector<1x32xf32> to vector<16x32xf32>
    %18 = arith.addf %16, %17 : vector<16x32xf32>
    %cst_20 = arith.constant dense<0.000000e+00> : vector<16xf32>
    %19 = vector.multi_reduction <add>, %18, %cst_20 [1] : vector<16x32xf32> to vector<16xf32>
    %20 = vector.shape_cast %19 : vector<16xf32> to vector<16x1xf32>
    %cst_21 = arith.constant 3.200000e+01 : f32
    %21 = vector.broadcast %cst_21 : f32 to vector<16x1xf32>
    %22 = arith.divf %20, %21 : vector<16x1xf32>
    %23 = vector.broadcast %22 : vector<16x1xf32> to vector<16x32xf32>
    %24 = arith.subf %18, %23 : vector<16x32xf32>
    %25 = arith.mulf %24, %24 : vector<16x32xf32>
    %cst_22 = arith.constant dense<0.000000e+00> : vector<16xf32>
    %26 = vector.multi_reduction <add>, %25, %cst_22 [1] : vector<16x32xf32> to vector<16xf32>
    %27 = vector.shape_cast %26 : vector<16xf32> to vector<16x1xf32>
    %cst_23 = arith.constant 3.200000e+01 : f32
    %28 = vector.broadcast %cst_23 : f32 to vector<16x1xf32>
    %29 = arith.divf %27, %28 : vector<16x1xf32>
    %30 = vector.broadcast %22 : vector<16x1xf32> to vector<16x32xf32>
    %31 = arith.subf %18, %30 : vector<16x32xf32>
    %cst_24 = arith.constant 9.99999974E-6 : f32
    %32 = vector.broadcast %cst_24 : f32 to vector<16x1xf32>
    %33 = arith.addf %29, %32 : vector<16x1xf32>
    %34 = math.rsqrt %33 : vector<16x1xf32>
    %35 = vector.broadcast %34 : vector<16x1xf32> to vector<16x32xf32>
    %36 = arith.mulf %31, %35 : vector<16x32xf32>
    %37 = vector.broadcast %4 : vector<1x32xf32> to vector<16x32xf32>
    %38 = arith.mulf %36, %37 : vector<16x32xf32>
    %39 = vector.broadcast %5 : vector<1x32xf32> to vector<16x32xf32>
    %40 = arith.addf %38, %39 : vector<16x32xf32>
    %cst_25 = arith.constant 5.000000e-01 : f32
    %41 = vector.broadcast %cst_25 : f32 to vector<16x32xf32>
    %42 = arith.mulf %41, %40 : vector<16x32xf32>
    %cst_26 = arith.constant 0.707106769 : f32
    %43 = vector.broadcast %cst_26 : f32 to vector<16x32xf32>
    %44 = arith.mulf %40, %43 : vector<16x32xf32>
    %45 = math.erf %44 : vector<16x32xf32>
    %cst_27 = arith.constant 1.000000e+00 : f32
    %46 = vector.broadcast %cst_27 : f32 to vector<16x32xf32>
    %47 = arith.addf %46, %45 : vector<16x32xf32>
    %48 = arith.mulf %42, %47 : vector<16x32xf32>
    %c0_28 = arith.constant 0 : index
    %c0_29 = arith.constant 0 : index
    %49 = vector.load %arg4[%c0_28, %c0_29] : memref<32x32xf32, #tpu.memory_space<vmem>>, vector<32x32xf32>
    %cst_30 = arith.constant dense<0.000000e+00> : vector<16x32xf32>
    %50 = tpu.matmul %48, %49, %cst_30 {dimension_numbers = #tpu.dot_dimension_numbers<[1], [0], [0], [1], [0, 0, 1, 1], [], []>} : vector<16x32xf32>, vector<32x32xf32>, vector<16x32xf32> -> vector<16x32xf32>
    %51 = vector.broadcast %6 : vector<1x32xf32> to vector<16x32xf32>
    %52 = arith.addf %50, %51 : vector<16x32xf32>
    %cst_31 = arith.constant dense<0.000000e+00> : vector<16xf32>
    %53 = vector.multi_reduction <add>, %52, %cst_31 [1] : vector<16x32xf32> to vector<16xf32>
    %54 = vector.shape_cast %53 : vector<16xf32> to vector<16x1xf32>
    %cst_32 = arith.constant 3.200000e+01 : f32
    %55 = vector.broadcast %cst_32 : f32 to vector<16x1xf32>
    %56 = arith.divf %54, %55 : vector<16x1xf32>
    %57 = vector.broadcast %56 : vector<16x1xf32> to vector<16x32xf32>
    %58 = arith.subf %52, %57 : vector<16x32xf32>
    %59 = arith.mulf %58, %58 : vector<16x32xf32>
    %cst_33 = arith.constant dense<0.000000e+00> : vector<16xf32>
    %60 = vector.multi_reduction <add>, %59, %cst_33 [1] : vector<16x32xf32> to vector<16xf32>
    %61 = vector.shape_cast %60 : vector<16xf32> to vector<16x1xf32>
    %cst_34 = arith.constant 3.200000e+01 : f32
    %62 = vector.broadcast %cst_34 : f32 to vector<16x1xf32>
    %63 = arith.divf %61, %62 : vector<16x1xf32>
    %64 = vector.broadcast %56 : vector<16x1xf32> to vector<16x32xf32>
    %65 = arith.subf %52, %64 : vector<16x32xf32>
    %cst_35 = arith.constant 9.99999974E-6 : f32
    %66 = vector.broadcast %cst_35 : f32 to vector<16x1xf32>
    %67 = arith.addf %63, %66 : vector<16x1xf32>
    %68 = math.rsqrt %67 : vector<16x1xf32>
    %69 = vector.broadcast %68 : vector<16x1xf32> to vector<16x32xf32>
    %70 = arith.mulf %65, %69 : vector<16x32xf32>
    %71 = vector.broadcast %7 : vector<1x32xf32> to vector<16x32xf32>
    %72 = arith.mulf %70, %71 : vector<16x32xf32>
    %73 = vector.broadcast %8 : vector<1x32xf32> to vector<16x32xf32>
    %74 = arith.addf %72, %73 : vector<16x32xf32>
    %cst_36 = arith.constant 5.000000e-01 : f32
    %75 = vector.broadcast %cst_36 : f32 to vector<16x32xf32>
    %76 = arith.mulf %75, %74 : vector<16x32xf32>
    %cst_37 = arith.constant 0.707106769 : f32
    %77 = vector.broadcast %cst_37 : f32 to vector<16x32xf32>
    %78 = arith.mulf %74, %77 : vector<16x32xf32>
    %79 = math.erf %78 : vector<16x32xf32>
    %cst_38 = arith.constant 1.000000e+00 : f32
    %80 = vector.broadcast %cst_38 : f32 to vector<16x32xf32>
    %81 = arith.addf %80, %79 : vector<16x32xf32>
    %82 = arith.mulf %76, %81 : vector<16x32xf32>
    %c0_39 = arith.constant 0 : index
    %c0_40 = arith.constant 0 : index
    %83 = vector.load %arg5[%c0_39, %c0_40] : memref<32x32xf32, #tpu.memory_space<vmem>>, vector<32x32xf32>
    %cst_41 = arith.constant dense<0.000000e+00> : vector<16x32xf32>
    %84 = tpu.matmul %82, %83, %cst_41 {dimension_numbers = #tpu.dot_dimension_numbers<[1], [0], [0], [1], [0, 0, 1, 1], [], []>} : vector<16x32xf32>, vector<32x32xf32>, vector<16x32xf32> -> vector<16x32xf32>
    %85 = vector.extract_strided_slice %84 {offsets = [0, 0], sizes = [16, 16], strides = [1, 1]} : vector<16x32xf32> to vector<16x16xf32>
    %86 = vector.broadcast %9 : vector<1x16xf32> to vector<16x16xf32>
    %87 = arith.addf %85, %86 : vector<16x16xf32>
    %88 = math.tanh %87 : vector<16x16xf32>
    %89 = vector.extract_strided_slice %84 {offsets = [0, 16], sizes = [16, 16], strides = [1, 1]} : vector<16x32xf32> to vector<16x16xf32>
    %90 = vector.broadcast %10 : vector<1x16xf32> to vector<16x16xf32>
    %91 = arith.addf %89, %90 : vector<16x16xf32>
    %92 = arith.negf %91 : vector<16x16xf32>
    %93 = math.exp %92 : vector<16x16xf32>
    %cst_42 = arith.constant 1.000000e+00 : f32
    %94 = vector.broadcast %cst_42 : f32 to vector<16x16xf32>
    %95 = arith.addf %94, %93 : vector<16x16xf32>
    %96 = arith.divf %94, %95 : vector<16x16xf32>
    %97 = arith.mulf %88, %96 : vector<16x16xf32>
    %98 = vector.broadcast %11 : vector<1x16xf32> to vector<16x16xf32>
    %99 = arith.mulf %97, %98 : vector<16x16xf32>
    %100 = vector.shape_cast %99 : vector<16x16xf32> to vector<2x8x16xf32>
    %cst_43 = arith.constant dense<0.000000e+00> : vector<2x8xf32>
    %101 = vector.multi_reduction <add>, %100, %cst_43 [2] : vector<2x8x16xf32> to vector<2x8xf32>
    %102 = vector.broadcast %12 : vector<1x1xf32> to vector<2x8xf32>
    %103 = arith.addf %101, %102 : vector<2x8xf32>
    %c0_44 = arith.constant 0 : index
    %c0_45 = arith.constant 0 : index
    %104 = vector.load %arg9[%c0_44, %c0_45] : memref<2x1xf32, #tpu.memory_space<vmem>>, vector<2x1xf32>
    %cst_46 = arith.constant dense<0xFF800000> : vector<2xf32>
    %105 = vector.multi_reduction <maximumf>, %103, %cst_46 [1] : vector<2x8xf32> to vector<2xf32>
    %106 = vector.shape_cast %105 : vector<2xf32> to vector<2x1xf32>
    %107 = arith.maximumf %104, %106 : vector<2x1xf32>
    %108 = arith.subf %104, %107 : vector<2x1xf32>
    %109 = math.exp %108 : vector<2x1xf32>
    %110 = vector.broadcast %107 : vector<2x1xf32> to vector<2x8xf32>
    %111 = arith.subf %103, %110 : vector<2x8xf32>
    %112 = math.exp %111 : vector<2x8xf32>
    %c0_47 = arith.constant 0 : index
    %c0_48 = arith.constant 0 : index
    %113 = vector.load %arg10[%c0_47, %c0_48] : memref<2x1xf32, #tpu.memory_space<vmem>>, vector<2x1xf32>
    %114 = arith.mulf %109, %113 : vector<2x1xf32>
    %cst_49 = arith.constant dense<0.000000e+00> : vector<2xf32>
    %115 = vector.multi_reduction <add>, %112, %cst_49 [1] : vector<2x8xf32> to vector<2xf32>
    %116 = vector.shape_cast %115 : vector<2xf32> to vector<2x1xf32>
    %117 = arith.addf %114, %116 : vector<2x1xf32>
    %c0_50 = arith.constant 0 : index
    %c0_51 = arith.constant 0 : index
    %118 = vector.load %arg10[%c0_50, %c0_51] : memref<2x1xf32, #tpu.memory_space<vmem>>, vector<2x1xf32>
    tpu.vector_store %arg10[%c0_50, %c0_51], %117 {strides = array<i32>} : memref<2x1xf32, #tpu.memory_space<vmem>>, vector<2x1xf32>,
    %119 = vector.shape_cast %82 : vector<16x32xf32> to vector<2x8x32xf32>
    %c0_52 = arith.constant 0 : index
    %c0_53 = arith.constant 0 : index
    %120 = vector.load %arg11[%c0_52, %c0_53] : memref<2x32xf32, #tpu.memory_space<vmem>>, vector<2x32xf32>
    %121 = vector.broadcast %109 : vector<2x1xf32> to vector<2x32xf32>
    %122 = arith.mulf %121, %120 : vector<2x32xf32>
    %123 = vector.shape_cast %112 : vector<2x8xf32> to vector<2x8x1xf32>
    %124 = vector.broadcast %123 : vector<2x8x1xf32> to vector<2x8x32xf32>
    %125 = arith.mulf %124, %119 : vector<2x8x32xf32>
    %cst_54 = arith.constant dense<0.000000e+00> : vector<2x32xf32>
    %126 = vector.multi_reduction <add>, %125, %cst_54 [1] : vector<2x8x32xf32> to vector<2x32xf32>
    %127 = arith.addf %122, %126 : vector<2x32xf32>
    %c0_55 = arith.constant 0 : index
    %c0_56 = arith.constant 0 : index
    %128 = vector.load %arg11[%c0_55, %c0_56] : memref<2x32xf32, #tpu.memory_space<vmem>>, vector<2x32xf32>
    tpu.vector_store %arg11[%c0_55, %c0_56], %127 {strides = array<i32>} : memref<2x32xf32, #tpu.memory_space<vmem>>, vector<2x32xf32>,
    %c0_57 = arith.constant 0 : index
    %c0_58 = arith.constant 0 : index
    %129 = vector.load %arg9[%c0_57, %c0_58] : memref<2x1xf32, #tpu.memory_space<vmem>>, vector<2x1xf32>
    tpu.vector_store %arg9[%c0_57, %c0_58], %107 {strides = array<i32>} : memref<2x1xf32, #tpu.memory_space<vmem>>, vector<2x1xf32>,
    %c0_i32_59 = arith.constant 0 : i32
    %130 = arith.cmpi eq, %arg1, %c0_i32_59 : i32
    %131 = arith.extui %130 : i1 to i32
    %c0_i32_60 = arith.constant 0 : i32
    %132 = arith.cmpi ne, %131, %c0_i32_60 : i32
    scf.if %132 {
      %c0_61 = arith.constant 0 : index
      %c0_62 = arith.constant 0 : index
      %133 = vector.load %arg11[%c0_61, %c0_62] : memref<2x32xf32, #tpu.memory_space<vmem>>, vector<2x32xf32>
      %c0_63 = arith.constant 0 : index
      %c0_64 = arith.constant 0 : index
      %134 = vector.load %arg10[%c0_63, %c0_64] : memref<2x1xf32, #tpu.memory_space<vmem>>, vector<2x1xf32>
      %135 = vector.broadcast %134 : vector<2x1xf32> to vector<2x32xf32>
      %136 = arith.divf %133, %135 : vector<2x32xf32>
      %c0_65 = arith.constant 0 : index
      %c0_66 = arith.constant 0 : index
      %137 = vector.load %arg8[%c0_65, %c0_66] : memref<2x32xf32, #tpu.memory_space<vmem>>, vector<2x32xf32>
      tpu.vector_store %arg8[%c0_65, %c0_66], %136 {strides = array<i32>} : memref<2x32xf32, #tpu.memory_space<vmem>>, vector<2x32xf32>,
    } else {
    }
    return
  }
  func.func @transform_0(%arg0: i32, %arg1: i32) -> (i32, i32, i32) {
    %c0_i32 = arith.constant 0 : i32
    %c0_i32_0 = arith.constant 0 : i32
    return %arg0, %arg1, %c0_i32 : i32, i32, i32
  }
  func.func @transform_1(%arg0: i32, %arg1: i32) -> (i32, i32) {
    %c0_i32 = arith.constant 0 : i32
    %c0_i32_0 = arith.constant 0 : i32
    %c0_i32_1 = arith.constant 0 : i32
    return %c0_i32, %c0_i32_0 : i32, i32
  }
  func.func @transform_2(%arg0: i32, %arg1: i32) -> (i32, i32) {
    %c0_i32 = arith.constant 0 : i32
    %c0_i32_0 = arith.constant 0 : i32
    %c0_i32_1 = arith.constant 0 : i32
    return %c0_i32, %c0_i32_0 : i32, i32
  }
  func.func @transform_3(%arg0: i32, %arg1: i32) -> (i32, i32) {
    %c0_i32 = arith.constant 0 : i32
    %c0_i32_0 = arith.constant 0 : i32
    %c0_i32_1 = arith.constant 0 : i32
    return %c0_i32, %c0_i32_0 : i32, i32
  }
  func.func @transform_4(%arg0: i32, %arg1: i32) -> (i32, i32) {
    %c0_i32 = arith.constant 0 : i32
    %c0_i32_0 = arith.constant 0 : i32
    %c0_i32_1 = arith.constant 0 : i32
    return %c0_i32, %c0_i32_0 : i32, i32
  }
  func.func @transform_5(%arg0: i32, %arg1: i32) -> (i32, i32) {
    %c0_i32 = arith.constant 0 : i32
    %c0_i32_0 = arith.constant 0 : i32
    %c0_i32_1 = arith.constant 0 : i32
    return %c0_i32, %c0_i32_0 : i32, i32
  }
  func.func @transform_6(%arg0: i32, %arg1: i32) -> (i32, i32) {
    %c0_i32 = arith.constant 0 : i32
    %c0_i32_0 = arith.constant 0 : i32
    return %arg0, %c0_i32 : i32, i32
  }
}

</mosaic_0001>

<bundles_post_ra>
// kernel: abmil_embedder.1
= control target key start
LH: loop header
LB: loop body
LE: loop exit
PB: predicated region body
PF: predicated region fallthrough
CT: control target
= control target key end

     0   :  { %vm53_vm0 = vcmask 261120   ;;  %s883_s0 = inlined_call_operand.vmem [shape: f32[2,8,32], index: 0, kind: input, shape index: {}]   ;;  %s884_s1 = inlined_call_operand.vmem [shape: f32[32,32], index: 1, kind: input, shape index: {}]   ;;  %s885_s2 = inlined_call_operand.vmem [shape: f32[32,32], index: 2, kind: input, shape index: {}]   ;;  %s886_s3 = inlined_call_operand.vmem [shape: f32[32,32], index: 3, kind: input, shape index: {}]   ;;  %s887_s4 = inlined_call_operand.vmem [shape: f32[6,32], index: 4, kind: input, shape index: {}]   ;;  %s888_s5 = inlined_call_operand.vmem [shape: f32[4,16], index: 5, kind: input, shape index: {}]   ;;  %s889_s6 = inlined_call_operand.hbm [shape: f32[2,32], index: 6, kind: output, shape index: {}]  }
   0x1   :  { %v48_v0 = vld [vmem:[%s884_s1 + $0x18] sm:$0xff]  ;;  %v47_v1 = vld [vmem:[%s884_s1 + $0x10] sm:$0xff]  ;;  %v43_v2 = vld [vmem:[%s883_s0] sm:$0xff] }
   0x2   :  { %630 = vmatprep.subr.mxu0 %v48_v0  ;;  %v46_v3 = vld [vmem:[%s884_s1 + $0x8] sm:$0xff]  ;;  %638 = vmatprep.mubr.msk.f32.mxu0 %vm53_vm0, %v43_v2 }
   0x3   :  { %631 = vmatpush3.msra.mxu0 %v48_v0 }
   0x4   :  { %11 = vsyncpa [#allocation6], 0  ;;  %632 = vmatprep.subr.mxu0 %v47_v1  ;;  %v45_v4 = vld [vmem:[%s884_s1] sm:$0xff]  ;;  %v44_v5 = vld [vmem:[%s883_s0 + $0x8] sm:$0xff]  ;;  %s731_s8 = smov 16   ;;  %s732_s11 = smov 112  }
   0x5   :  { %633 = vmatpush3.msra.mxu0 %v47_v1  ;;  %v595_v7 = vld [vmem:[%s887_s4] ss:$0 sm:$0xff]  ;;  %v187_v23 = vld [vmem:[%s885_s2 + $0x18] sm:$0xff]  ;;  %v186_v24 = vld [vmem:[%s885_s2 + $0x10] sm:$0xff]  ;;  %vm452_vm1 = vcmask 130048   ;;  %vm478_vm2 = vcmask 1041409  }
   0x6   :  { %634 = vmatprep.subr.mxu0 %v46_v3  ;;  %641 = vmatprep.subr.mxu1 %v187_v23  ;;  %v185_v25 = vld [vmem:[%s885_s2 + $0x8] sm:$0xff]  ;;  %v184_v26 = vld [vmem:[%s885_s2] sm:$0xff]  ;;  %vm481_vm3 = vcmask 58368   ;;  %vm28_vm4 = vcmask 1024   ;;  %vm31_vm5 = vcmask 254976  }
   0x7   :  { %635 = vmatpush3.msra.mxu0 %v46_v3  ;;  %642 = vmatpush3.msra.mxu1 %v187_v23  ;;  %v598_v34 = vld [vmem:[%s887_s4 + $0x1] ss:$0 sm:$0xff]  ;;  %v599_v36 = vld [vmem:[%s887_s4 + $0x2] ss:$0 sm:$0xff]  ;;  %v600_v53 = vld [vmem:[%s887_s4 + $0x3] ss:$0 sm:$0xff] }
   0x8   :  { %636 = vmatprep.subr.mxu0 %v45_v4  ;;  %643 = vmatprep.subr.mxu1 %v186_v24 }
   0x9   :  { %637 = vmatpush3.msra.mxu0 %v45_v4  ;;  %644 = vmatpush3.msra.mxu1 %v186_v24 }
   0xa   :  { %639 = vmatmul.mubr.msk.f32.vlgmr.msra.gmra.mxu0 %vm53_vm0, %v44_v5  ;;  %645 = vmatprep.subr.mxu1 %v185_v25 }
   0xb   :  { %646 = vmatpush3.msra.mxu1 %v185_v25 }
   0xc   :  { %647 = vmatprep.subr.mxu1 %v184_v26 }
   0xd   :  { %648 = vmatpush3.msra.mxu1 %v184_v26 }
  0xca   :  { %v640_v6 = vpop.f32.mrf.mxu0 }
  0xcb   :  { %v132_v10 = vadd.f32 %v640_v6, %v595_v7  ;;  %v324_v6 = vld [vmem:[%s886_s3 + $0x18] sm:$0xff] }
  0xcc   :  { %v126_v8 = vpop.f32.mrf.mxu0  ;;  %652 = vmatprep.subr.mxu0 %v324_v6 }
  0xcd   :  { %v127_v9 = vadd.f32 %v595_v7, %v126_v8  ;;  %v138_v12 = vsel %vm53_vm0, %v132_v10, 0.0  ;;  %v323_v7 = vld [vmem:[%s886_s3 + $0x10] sm:$0xff]  ;;  %653 = vmatpush3.msra.mxu0 %v324_v6  ;;  %v322_v8 = vld [vmem:[%s886_s3 + $0x8] sm:$0xff] }
  0xce   :  { %654 = vmatprep.subr.mxu0 %v323_v7 }
  0xcf   :  { %v135_v11 = vsel %vm53_vm0, %v127_v9, 0.0  ;;  %655 = vmatpush3.msra.mxu0 %v323_v7 }
  0xd0   :  { %136 = vadd.xlane.f32.xlu0 %v135_v11  ;;  %656 = vmatprep.subr.mxu0 %v322_v8 }
  0xd1   :  { %657 = vmatpush3.msra.mxu0 %v322_v8 }
  0xd4   :  { %139 = vadd.xlane.f32.xlu0 %v138_v12 }
 0x159   :  { %v137_v13 = vpop.xlane.xlu0 %136 }
 0x15a   :  { %v142_v14 = vmul.f32 0.03125, %v137_v13 }
 0x15c   :  { %v144_v15 = vsub.f32 %v127_v9, %v142_v14  ;;  %v321_v9 = vld [vmem:[%s886_s3] sm:$0xff] }
 0x15d   :  { %v140_v16 = vpop.xlane.xlu0 %139  ;;  %658 = vmatprep.subr.mxu0 %v321_v9 }
 0x15e   :  { %v143_v17 = vmul.f32 0.03125, %v140_v16  ;;  %v146_v18 = vmul.f32 %v144_v15, %v144_v15  ;;  %659 = vmatpush3.msra.mxu0 %v321_v9 }
 0x160   :  { %v145_v19 = vsub.f32 %v132_v10, %v143_v17  ;;  %v148_v20 = vsel %vm53_vm0, %v146_v18, 0.0  ;;  %v608_v10 = vld [vmem:[%s888_s5 + $0x1] ss:$0 sm:$0xff]  ;;  %v603_v18 = vld [vmem:[%s887_s4 + $0x4] ss:$0 sm:$0xff] }
 0x161   :  { %149 = vadd.xlane.f32.xlu1 %v148_v20 }
 0x162   :  { %v147_v21 = vmul.f32 %v145_v19, %v145_v19 }
 0x164   :  { %v151_v22 = vsel %vm53_vm0, %v147_v21, 0.0  ;;  %v604_v21 = vld [vmem:[%s887_s4 + $0x5] ss:$0 sm:$0xff] }
 0x165   :  { %152 = vadd.xlane.f32.xlu1 %v151_v22 }
 0x1ea   :  { %v150_v27 = vpop.xlane.xlu1 %149 }
 0x1eb   :  { %v154_v28 = vmul.f32 0.03125, %v150_v27 }
 0x1ed   :  { %v156_v29 = vadd.f32 1e-05, %v154_v28 }
 0x1ee   :  { %v153_v30 = vpop.xlane.xlu1 %152 }
 0x1ef   :  { %673 = vrsqrt.f32 %v156_v29  ;;  %v155_v31 = vmul.f32 0.03125, %v153_v30 }
 0x1f1   :  { %v157_v32 = vadd.f32 1e-05, %v155_v31 }
 0x1f3   :  { %675 = vrsqrt.f32 %v157_v32 }
 0x1fc   :  { %v674_v33 = vpop.eup %673 }
 0x1fd   :  { %v160_v35 = vmul.f32 %v674_v33, %v144_v15 }
 0x1ff   :  { %v166_v37 = vmul.f32 %v598_v34, %v160_v35 }
 0x200   :  { %v676_v38 = vpop.eup %675 }
 0x201   :  { %v161_v39 = vmul.f32 %v676_v38, %v145_v19  ;;  %v172_v40 = vadd.f32 %v599_v36, %v166_v37 }
 0x203   :  { %v167_v41 = vmul.f32 %v598_v34, %v161_v39  ;;  %v176_v42 = vmul.f32 0.70710677, %v172_v40  ;;  %v174_v46 = vmul.f32 0.5, %v172_v40 }
 0x205   :  { %v173_v43 = vadd.f32 %v599_v36, %v167_v41  ;;  %677 = verf.f32 %v176_v42 }
 0x207   :  { %v177_v44 = vmul.f32 0.70710677, %v173_v43  ;;  %v175_v50 = vmul.f32 0.5, %v173_v43 }
 0x209   :  { %679 = verf.f32 %v177_v44 }
 0x212   :  { %v678_v45 = vpop.eup %677 }
 0x213   :  { %v180_v47 = vadd.f32 1.0, %v678_v45 }
 0x215   :  { %v182_v48 = vmul.f32 %v180_v47, %v174_v46 }
 0x216   :  { %v680_v49 = vpop.eup %679 }
 0x217   :  { %649 = vmatprep.mubr.msk.f32.mxu1 %vm53_vm0, %v182_v48  ;;  %v181_v51 = vadd.f32 1.0, %v680_v49  ;;  %v42_v48 = vld [vmem:[%s888_s5 + $0x3] sm:$0x1] }
 0x218   :  { %663 = vpush %v42_v48 }
 0x219   :  { %v183_v52 = vmul.f32 %v181_v51, %v175_v50  ;;  %v607_v51 = vld [vmem:[%s888_s5] ss:$0 sm:$0xff] }
 0x21b   :  { %650 = vmatmul.mubr.msk.f32.vlgmr.msra.gmra.mxu1 %vm53_vm0, %v183_v52 }
 0x249   :  { %s664_s16 = spop %663 }
 0x2db   :  { %v651_v54 = vpop.f32.mrf.mxu1 }
 0x2dc   :  { %v270_v55 = vadd.f32 %v651_v54, %v600_v53 }
 0x2dd   :  { %v264_v56 = vpop.f32.mrf.mxu1 }
 0x2de   :  { %v265_v57 = vadd.f32 %v600_v53, %v264_v56  ;;  %v276_v58 = vsel %vm53_vm0, %v270_v55, 0.0  ;;  %v611_v56 = vld [vmem:[%s888_s5 + $0x2] ss:$0 sm:$0xff]  ;;  %s736_s5 = smov [#allocation5]  }
 0x2df   :  { %277 = vadd.xlane.f32.xlu1 %v276_v58  ;;  %s587_s17 = sshll.u32 %s736_s5, 4  ;;  %s588_s17 = int_to_ptr.vmem [resolvable:$true] %s587_s17 }
 0x2e0   :  { %v273_v59 = vsel %vm53_vm0, %v265_v57, 0.0  ;;  %s709_s18 = scalar_lea.vmem %s588_s17, 32  ;;  %p714_p1 = scmp.lt.s32.totalorder %s588_s17, %s588_s17 }
 0x2e1   :  { %274 = vadd.xlane.f32.xlu0 %v273_v59  ;;  %p710_p0 = scmp.ne.s32.totalorder %s588_s17, %s709_s18  ;;  %p715_p2 = scmp.lt.s32.totalorder %s709_s18, %s709_s18 }
 0x2e3   :  { %p716_p3 = por %p715_p2, %p714_p1 }
 0x2e5   :  { %p717_p4 = pnand %p716_p3, %p710_p0 }
 0x368   :  { %v278_v60 = vpop.xlane.xlu1 %277 }
 0x369   :  { %v280_v61 = vmul.f32 0.03125, %v278_v60 }
 0x36a   :  { %v275_v62 = vpop.xlane.xlu0 %274 }
 0x36b   :  { %v282_v63 = vsub.f32 %v270_v55, %v280_v61  ;;  %v279_v0 = vmul.f32 0.03125, %v275_v62 }
 0x36d   :  { %v281_v1 = vsub.f32 %v265_v57, %v279_v0  ;;  %v284_v2 = vmul.f32 %v282_v63, %v282_v63 }
 0x36f   :  { %v288_v3 = vsel %vm53_vm0, %v284_v2, 0.0  ;;  %v283_v4 = vmul.f32 %v281_v1, %v281_v1 }
 0x370   :  { %289 = vadd.xlane.f32.xlu1 %v288_v3 }
 0x371   :  { %v285_v5 = vsel %vm53_vm0, %v283_v4, 0.0  ;;  %v461_v4 = vstv %s664_s16 }
 0x372   :  { %286 = vadd.xlane.f32.xlu0 %v285_v5 }
 0x388   :  { %419 = vrot.lane.b32.xlu0 %v608_v10, %s731_s8 }
 0x3f9   :  { %v290_v11 = vpop.xlane.xlu1 %289 }
 0x3fa   :  { %v292_v12 = vmul.f32 0.03125, %v290_v11 }
 0x3fb   :  { %v287_v13 = vpop.xlane.xlu0 %286 }
 0x3fc   :  { %v294_v14 = vadd.f32 1e-05, %v292_v12  ;;  %v291_v15 = vmul.f32 0.03125, %v287_v13 }
 0x3fe   :  { %681 = vrsqrt.f32 %v294_v14  ;;  %v293_v16 = vadd.f32 1e-05, %v291_v15  ;;  %v733_v14 = vmov -inf   ;;  %v734_v15 = vmov 0  }
 0x3ff   :  { %v420_v37 = vpop.permute.xlu0 %419  ;;  %29 = vst.msk [vmem:[#allocation2] sm:$0x3] %vm28_vm4, %v733_v14  ;;  %671 = vset.pattern.permute.xlu0 %v734_v15  ;;  %672 = vset.pattern.permute.xlu1 %v734_v15 }
 0x400   :  { %683 = vrsqrt.f32 %v293_v16  ;;  %v735_v16 = vmov 0.0  }
 0x401   :  { %30 = vst.msk [vmem:[#allocation3] sm:$0x3] %vm28_vm4, %v735_v16 }
 0x402   :  { %32 = vst.msk [vmem:[#allocation4] sm:$0x3] %vm31_vm5, %v735_v16 }
 0x40b   :  { %v682_v17 = vpop.eup %681 }
 0x40c   :  { %v298_v19 = vmul.f32 %v682_v17, %v282_v63  ;;  %v465_v17 = vld [vmem:[#allocation2] sm:$0x3] }
 0x40d   :  { %v684_v20 = vpop.eup %683 }
 0x40e   :  { %v297_v22 = vmul.f32 %v684_v20, %v281_v1  ;;  %v304_v23 = vmul.f32 %v603_v18, %v298_v19  ;;  %v468_v1 = vlaneseq }
 0x410   :  { %v303_v24 = vmul.f32 %v603_v18, %v297_v22  ;;  %v310_v25 = vadd.f32 %v604_v21, %v304_v23  ;;  %v469_v2 = vand.u32 127, %v468_v1  ;;  %v471_v3 = vshrl.u32 %v468_v1, 7 }
 0x412   :  { %v309_v26 = vadd.f32 %v604_v21, %v303_v24  ;;  %v314_v27 = vmul.f32 0.70710677, %v310_v25  ;;  %v312_v34 = vmul.f32 0.5, %v310_v25  ;;  %v472_v6 = vsub.s32 %v469_v2, %v471_v3 }
 0x413   :  { %v495_v21 = vsub.s32 0, %v471_v3  ;;  %v499_v22 = vsub.s32 1, %v471_v3 }
 0x414   :  { %v313_v28 = vmul.f32 0.70710677, %v309_v26  ;;  %685 = verf.f32 %v314_v27  ;;  %v311_v32 = vmul.f32 0.5, %v309_v26 }
 0x416   :  { %687 = verf.f32 %v313_v28 }
 0x421   :  { %v686_v29 = vpop.eup %685 }
 0x422   :  { %v318_v31 = vadd.f32 1.0, %v686_v29 }
 0x423   :  { %v688_v30 = vpop.eup %687 }
 0x424   :  { %v317_v33 = vadd.f32 1.0, %v688_v30  ;;  %v849_v36 = vmul.f32 %v318_v31, %v312_v34 }
 0x426   :  { %v847_v35 = vmul.f32 %v317_v33, %v311_v32 }
 0x428   :  { %660 = vmatprep.mubr.msk.f32.mxu0 %vm53_vm0, %v847_v35 }
 0x429   :  { %661 = vmatmul.mubr.msk.f32.vlgmr.msra.gmra.mxu0 %vm53_vm0, %v849_v36 }
 0x4e9   :  { %v662_v38 = vpop.f32.mrf.mxu0 }
 0x4ea   :  { %v423_v39 = vadd.f32 %v662_v38, %v420_v37  ;;  %v411_v53 = vadd.f32 %v662_v38, %v607_v51 }
 0x4eb   :  { %v397_v40 = vpop.f32.mrf.mxu0 }
 0x4ec   :  { %v610_v41 = vmul.f32 -1.442695, %v423_v39  ;;  %v422_v42 = vadd.f32 %v420_v37, %v397_v40  ;;  %v410_v52 = vadd.f32 %v607_v51, %v397_v40 }
 0x4ee   :  { %v609_v43 = vmul.f32 -1.442695, %v422_v42  ;;  %689 = vpow2.f32 %v610_v41  ;;  %v509_v42 = vld [vmem:[#allocation3] sm:$0x3] }
 0x4f0   :  { %691 = vpow2.f32 %v609_v43 }
 0x4fb   :  { %v690_v44 = vpop.eup %689 }
 0x4fc   :  { %v431_v47 = vadd.f32 1.0, %v690_v44 }
 0x4fd   :  { %v692_v45 = vpop.eup %691 }
 0x4fe   :  { %v430_v46 = vadd.f32 1.0, %v692_v45 }
 0x500   :  { %693 = vrcp.f32 %v430_v46 }
 0x501   :  { %695 = vrcp.f32 %v431_v47 }
 0x502   :  { %697 = vtanh.f32 %v410_v52 }
 0x503   :  { %699 = vtanh.f32 %v411_v53 }
 0x50d   :  { %v694_v49 = vpop.eup %693 }
 0x50e   :  { %438 = vrot.lane.b32.xlu1 %v694_v49, %s732_s11  ;;  %v696_v50 = vpop.eup %695 }
 0x50f   :  { %v698_v54 = vpop.eup %697 }
 0x510   :  { %v700_v59 = vpop.eup %699 }
 0x512   :  { %440 = vrot.lane.b32.xlu1 %v696_v50, %s732_s11 }
 0x580   :  { %v439_v55 = vpop.permute.xlu1 %438 }
 0x581   :  { %v444_v57 = vmul.f32 %v698_v54, %v439_v55 }
 0x583   :  { %v450_v58 = vmul.f32 %v611_v56, %v444_v57 }
 0x584   :  { %v441_v60 = vpop.permute.xlu1 %440 }
 0x585   :  { %v445_v61 = vmul.f32 %v700_v59, %v441_v60  ;;  %v453_v62 = vsel %vm452_vm1, %v450_v58, 0.0 }
 0x586   :  { %454 = vadd.xlane.f32.xlu1 %v453_v62  ;;  %v535_v62 = vld [vmem:[#allocation4] sm:$0x3] }
 0x587   :  { %v451_v63 = vmul.f32 %v611_v56, %v445_v61 }
 0x589   :  { %v456_v0 = vsel %vm452_vm1, %v451_v63, 0.0 }
 0x58a   :  { %457 = vadd.xlane.f32.xlu0 %v456_v0 }
 0x60f   :  { %v455_v5 = vpop.xlane.xlu1 %454 }
 0x610   :  { %v463_v7 = vadd.f32 %v461_v4, %v455_v5 }
 0x612   :  { %v473_v10 = vrot.slane %v463_v7, %v472_v6 }
 0x613   :  { %v458_v8 = vpop.xlane.xlu0 %457 }
 0x614   :  { %v464_v9 = vadd.f32 %v461_v4, %v458_v8 }
 0x616   :  { %v477_v11 = vrot.slane %v464_v9, %v472_v6 }
 0x618   :  { %v479_v12 = vsel %vm478_vm2, %v477_v11, %v473_v10 }
 0x619   :  { %v482_v13 = vsel %vm481_vm3, %v479_v12, -inf }
 0x61a   :  { %483 = vmax.xlane.f32.xlu0 %v482_v13 }
 0x6a3   :  { %v484_v18 = vpop.xlane.xlu0 %483 }
 0x6a4   :  { %v485_v19 = vmax.f32 %v465_v17, %v484_v18 }
 0x6a6   :  { %v486_v20 = vsub.f32 %v465_v17, %v485_v19  ;;  %567 = vst.msk [vmem:[#allocation2] sm:$0x3] %vm28_vm4, %v485_v19  ;;  %491 = vperm.xlu0 %671, %v485_v19  }
 0x6a8   :  { %v487_v40 = vmul.f32 1.442695, %v486_v20 }
 0x721   :  { %v492_v23 = vpop.permute.xlu0 %491 }
 0x722   :  { %v496_v24 = vrot.slane %v492_v23, %v495_v21  ;;  %v500_v25 = vrot.slane %v492_v23, %v499_v22 }
 0x724   :  { %v503_v26 = vsub.f32 %v463_v7, %v496_v24  ;;  %v504_v27 = vsub.f32 %v464_v9, %v500_v25 }
 0x726   :  { %v505_v28 = vmul.f32 1.442695, %v503_v26  ;;  %v507_v29 = vmul.f32 1.442695, %v504_v27 }
 0x728   :  { %701 = vpow2.f32 %v505_v28 }
 0x729   :  { %703 = vpow2.f32 %v507_v29 }
 0x72a   :  { %705 = vpow2.f32 %v487_v40 }
 0x735   :  { %v702_v30 = vpop.eup %701 }
 0x736   :  { %514 = vperm.xlu1 %672, %v702_v30   ;;  %v704_v31 = vpop.eup %703 }
 0x737   :  { %v706_v41 = vpop.eup %705 }
 0x738   :  { %v510_v43 = vmul.f32 %v706_v41, %v509_v42 }
 0x73a   :  { %517 = vperm.xlu1 %672, %v704_v31  }
 0x7b1   :  { %v515_v32 = vpop.permute.xlu1 %514 }
 0x7b2   :  { %v522_v34 = vrot.slane %v515_v32, %v472_v6  ;;  %v544_v48 = vmul.f32 %v515_v32, %v847_v35 }
 0x7b4   :  { %v546_v50 = vsel %vm53_vm0, %v544_v48, 0.0 }
 0x7b5   :  { %v518_v33 = vpop.permute.xlu1 %517  ;;  %v547_v52 = vrot.slane %v546_v50, 4 }
 0x7b6   :  { %v526_v37 = vrot.slane %v518_v33, %v472_v6  ;;  %v545_v47 = vmul.f32 %v518_v33, %v849_v36 }
 0x7b7   :  { %v548_v54 = vadd.f32 %v547_v52, %v546_v50 }
 0x7b8   :  { %v527_v38 = vsel %vm478_vm2, %v526_v37, %v522_v34  ;;  %v553_v49 = vsel %vm53_vm0, %v545_v47, 0.0 }
 0x7b9   :  { %v529_v39 = vsel %vm481_vm3, %v527_v38, 0.0  ;;  %v554_v51 = vrot.slane %v553_v49, 4  ;;  %v549_v56 = vrot.slane %v548_v54, 2 }
 0x7ba   :  { %530 = vadd.xlane.f32.xlu1 %v529_v39 }
 0x7bb   :  { %v555_v53 = vadd.f32 %v554_v51, %v553_v49  ;;  %v550_v58 = vadd.f32 %v549_v56, %v548_v54 }
 0x7bd   :  { %v556_v55 = vrot.slane %v555_v53, 2  ;;  %v551_v60 = vrot.slane %v550_v58, 1 }
 0x7bf   :  { %v557_v57 = vadd.f32 %v556_v55, %v555_v53  ;;  %v552_v36 = vadd.f32 %v551_v60, %v550_v58 }
 0x7c1   :  { %v558_v59 = vrot.slane %v557_v57, 1 }
 0x7c3   :  { %v559_v63 = vadd.f32 %v558_v59, %v557_v57 }
 0x7c5   :  { %v562_v1 = vsel %vm478_vm2, %v559_v63, %v552_v36 }
 0x843   :  { %v531_v44 = vpop.xlane.xlu1 %530 }
 0x844   :  { %v532_v45 = vadd.f32 %v531_v44, %v510_v43 }
 0x846   :  { %534 = vst.msk [vmem:[#allocation3] sm:$0x3] %vm28_vm4, %v532_v45 }
 0x84d   :  { %v572_v46 = vld [vmem:[#allocation3] sm:$0x3] }
 0x84e   :  { %575 = vperm.xlu0 %671, %v572_v46  }
 0x852   :  { %538 = vperm.xlu0 %671, %v706_v41  }
 0x8c9   :  { %v576_v61 = vpop.permute.xlu0 %575 }
 0x8ca   :  { %707 = vrcp.f32 %v576_v61 }
 0x8cd   :  { %v539_v35 = vpop.permute.xlu0 %538 }
 0x8ce   :  { %v541_v0 = vmul.f32 %v539_v35, %v535_v62 }
 0x8d0   :  { %v564_v2 = vadd.f32 %v562_v1, %v541_v0 }
 0x8d2   :  { %566 = vst.msk [vmem:[#allocation4] sm:$0x3] %vm31_vm5, %v564_v2 }
 0x8d7   :  { %v708_v3 = vpop.eup %707 }
 0x8d9   :  { %v571_v4 = vld [vmem:[#allocation4] sm:$0x3] }
 0x8da   :  { %v579_v5 = vmul.f32 %v708_v3, %v571_v4 }
 0x8dc   :  { %580 = vst.msk [vmem:[#allocation5] sm:$0x3] %vm31_vm5, %v579_v5 }
 0x8dd   :  { %720 = shalt.err (!%p717_p4)
}
 0x8de   :  { %590 = dma.vmem_to_hbm [thread:$0]  %s588_s17, 32, %s889_s6, [#allocation6]  }
 0x8df   :  { %729 = dma.done.wait [#allocation6], 32  }
 0x8e0   :  { %730 = vsyncadd [#allocation6], 4294967264 }
 0x8e1   :  { %594 = vsyncpa [#allocation6], 1 }

</bundles_post_ra>
